<compile_context>
chip_gen: v7x
topology: tpu7x:2x2x1
jax: 0.10.0
libtpu: 0.0.40
codegen_flags: <defaults>
</compile_context>

<pallas_src>
import jax
import jax.numpy as jnp
from jax.experimental import pallas as pl
from jax.experimental.pallas import tpu as pltpu


def _se_block_kernel(x_ref, w1t_ref, w2t_ref, o_ref):
    x = x_ref[...]        # (TB, D), native dtype (f32 / bf16) -> straight to MXU
    w1t = w1t_ref[...]    # (D, H)  fc1.weight^T, VMEM-resident
    w2t = w2t_ref[...]    # (H, D)  fc2.weight^T, VMEM-resident

    # fc1: x @ W1^T -- natural (K-last LHS / K-first RHS) contraction, f32 acc.
    h = jnp.dot(x, w1t, preferred_element_type=jnp.float32)   # (TB, H) f32
    h = jnp.maximum(h, 0.0)                                   # ReLU

    # fc2 on the MXU (even for tiny H: MXU is otherwise idle, keeps VPU/XLU
    # free so the kernel stays DMA-bound).  For sub-f32 weights the hidden
    # activation is rounded to the weight dtype before the second matmul
    # (exact for f32 weights; documented deviation for bf16 models).
    s = jnp.dot(h.astype(w2t.dtype), w2t,
                preferred_element_type=jnp.float32)           # (TB, D) f32

    # Exact, numerically-safe sigmoid in f32: exp on the EUP + exact divide.
    # exp(-s) -> +inf for very negative s still gives gate == 0 (1/inf).
    # (If v7x profiling shows the EUP co-binding with DMA, switch to
    #  0.5 * jnp.tanh(0.5 * s) + 0.5 -- one EUP push per element.)
    gate = 1.0 / (1.0 + jnp.exp(-s))

    o_ref[...] = (x.astype(jnp.float32) * gate).astype(o_ref.dtype)


def _pick_batch_tile(batch, d, itemsize):
    """Rows per grid step: byte-targeted, VMEM-safe, >=2 grid steps, divisor-preferring."""
    itemsize = max(int(itemsize), 1)
    # Full sublane packing: 8 rows/vreg for 32-bit, 16 for bf16, 32 for 8-bit.
    sub = 8 if itemsize >= 4 else (16 if itemsize == 2 else 32)

    # ~4 MiB of x per grid step keeps the DMA at the HBM roofline on all
    # generations (the ~0.35us fixed per-step overhead is <1% at this size).
    target_bytes = 4 * 1024 * 1024
    tb = max(sub, target_bytes // (d * itemsize))

    # VMEM accounting: x+out double buffers (4*tb*d*itemsize) plus the f32
    # intermediates (~3*tb*d*4); stay inside a conservative 32 MiB so the
    # kernel is safe even on v7x's 64 MiB physical VMEM.
    budget = 32 * 1024 * 1024
    per_row = 4 * d * itemsize + 3 * d * 4
    tb = min(tb, max(sub, budget // per_row))

    # At least 2 grid steps so the "parallel" batch axis can be split across
    # both TensorCores on v7x (harmless on single-TC v5e/v6e).
    tb = min(tb, max(sub, -(-batch // 2)))

    tb = max(sub, (tb // sub) * sub)

    # Prefer a tile that divides the batch exactly -> no masked tail block,
    # no padding, no extra HBM traffic.
    cand = tb
    while cand >= sub:
        if batch % cand == 0:
            return int(cand)
        cand -= sub
    return int(tb)


def _vmem_limit_bytes(tb, d, h, x_itemsize, w_itemsize):
    stream = 4 * tb * d * x_itemsize             # x + out double buffers
    weights = 4 * h * d * w_itemsize             # W1^T + W2^T (x2 buffering)
    interm = 3 * tb * d * 4 + 2 * tb * h * 4     # f32 s/gate/h temporaries (slack)
    total = stream + weights + interm + (8 << 20)
    return int(min(max(total, 16 << 20), 48 << 20))   # v7x-safe ceiling


def se_block(x, w1t, w2t, *, tb=None):
    """SE block forward.

    x:   (B, D)
    w1t: (D, H) == fc1.weight.T  (torch fc1.weight is (H, D); transposed once at init)
    w2t: (H, D) == fc2.weight.T  (torch fc2.weight is (D, H); transposed once at init)
    """
    B, D = x.shape
    Dw, H = w1t.shape
    assert Dw == D, (w1t.shape, x.shape)
    assert w2t.shape == (H, D), (w2t.shape, (H, D))

    x_item = jnp.dtype(x.dtype).itemsize
    if tb is None:
        tb = _pick_batch_tile(B, D, x_item)
    tb = int(tb)

    grid = (pl.cdiv(B, tb),)

    return pl.pallas_call(
        _se_block_kernel,
        out_shape=jax.ShapeDtypeStruct((B, D), x.dtype),
        grid=grid,
        in_specs=[
            pl.BlockSpec((tb, D), lambda i: (i, 0)),   # stream x over batch tiles
            pl.BlockSpec((D, H), lambda i: (0, 0)),    # W1^T resident in VMEM
            pl.BlockSpec((H, D), lambda i: (0, 0)),    # W2^T resident in VMEM
        ],
        out_specs=pl.BlockSpec((tb, D), lambda i: (i, 0)),
        compiler_params=pltpu.CompilerParams(
            # Batch tiles are independent -> shard across TensorCores on v7x.
            dimension_semantics=("parallel",),
            vmem_limit_bytes=_vmem_limit_bytes(
                tb, D, H, x_item, jnp.dtype(w1t.dtype).itemsize),
        ),
    )(x, w1t, w2t)


def se_block_ref(x, w1, w2):
    """Pure-JAX reference matching the PyTorch forward (torch weight layouts)."""
    hp = jax.lax.Precision.HIGHEST
    h = jnp.maximum(jnp.dot(x, w1.T, precision=hp), 0.0)
    s = jax.nn.sigmoid(jnp.dot(h, w2.T, precision=hp))
    return x * s


if __name__ == "__main__":
    # Small shapes consistent with the module; feature dim kept lane-dense
    # (multiple of 128) and divisible by reduction=16.
    batch = 128
    input_dim = 128
    reduction = 16
    hidden = input_dim // reduction   # 8

    key = jax.random.PRNGKey(0)
    kx, k1, k2 = jax.random.split(key, 3)

    x = jax.random.normal(kx, (batch, input_dim), dtype=jnp.float32)
    # torch nn.Linear weight layouts (bias=False):
    #   fc1.weight: (hidden, input_dim), fc2.weight: (input_dim, hidden)
    w1 = jax.random.normal(k1, (hidden, input_dim), dtype=jnp.float32) * 0.1
    w2 = jax.random.normal(k2, (input_dim, hidden), dtype=jnp.float32) * 0.1

    # Pre-transpose BOTH weights once at init time (static parameters); the
    # per-call wrapper / kernel never materialize transposed copies.
    w1t = jnp.transpose(w1)   # (input_dim, hidden)
    w2t = jnp.transpose(w2)   # (hidden, input_dim)

    # Auto tile pick -> tb=64, grid=(2,): exercises the batch-tiled,
    # double-buffered path and keeps >=2 grid steps for v7x 2-TC occupancy.
    out = se_block(x, w1t, w2t)
    out = jax.block_until_ready(out)

    ref = se_block_ref(x, w1, w2)
    assert out.shape == (batch, input_dim)
    # Tolerance covers MXU f32-pass accumulation-order/precision differences
    # vs the HIGHEST-precision XLA reference; the sigmoid itself is exact.
    assert bool(jnp.allclose(out, ref, atol=5e-3, rtol=5e-3)), "mismatch vs reference"

    print("KERNEL_OK")
</pallas_src>

<mosaic_0001>
module attributes {stable_mosaic.version = 11 : i64} {
  func.func @_se_block_kernel(%arg0: i32, %arg1: memref<64x128xf32, #tpu.memory_space<vmem>>, %arg2: memref<128x8xf32, #tpu.memory_space<vmem>>, %arg3: memref<8x128xf32, #tpu.memory_space<vmem>>, %arg4: memref<64x128xf32, #tpu.memory_space<vmem>>) attributes {dimension_semantics = [#tpu.dimension_semantics<parallel>], iteration_bounds = array<i64: 2>, scalar_prefetch = 0 : i64, scratch_operands = 0 : i64, tpu.core_type = #tpu.core_type<tc>, window_params = [{transform_indices = @transform_0, window_bounds = array<i64: 64, 128>}, {pipeline_mode = #tpu.pipeline_mode<synchronous>, transform_indices = @transform_1, window_bounds = array<i64: 128, 8>}, {pipeline_mode = #tpu.pipeline_mode<synchronous>, transform_indices = @transform_2, window_bounds = array<i64: 8, 128>}, {transform_indices = @transform_3, window_bounds = array<i64: 64, 128>}]} {
    %c0 = arith.constant 0 : index
    %c0_0 = arith.constant 0 : index
    %0 = vector.load %arg1[%c0, %c0_0] : memref<64x128xf32, #tpu.memory_space<vmem>>, vector<64x128xf32>
    %c0_1 = arith.constant 0 : index
    %c0_2 = arith.constant 0 : index
    %1 = vector.load %arg2[%c0_1, %c0_2] : memref<128x8xf32, #tpu.memory_space<vmem>>, vector<128x8xf32>
    %c0_3 = arith.constant 0 : index
    %c0_4 = arith.constant 0 : index
    %2 = vector.load %arg3[%c0_3, %c0_4] : memref<8x128xf32, #tpu.memory_space<vmem>>, vector<8x128xf32>
    %cst = arith.constant dense<0.000000e+00> : vector<64x8xf32>
    %3 = tpu.matmul %0, %1, %cst {dimension_numbers = #tpu.dot_dimension_numbers<[1], [0], [0], [1], [0, 0, 1, 1], [], []>} : vector<64x128xf32>, vector<128x8xf32>, vector<64x8xf32> -> vector<64x8xf32>
    %cst_5 = arith.constant 0.000000e+00 : f32
    %4 = vector.broadcast %cst_5 : f32 to vector<64x8xf32>
    %5 = arith.maximumf %3, %4 : vector<64x8xf32>
    %cst_6 = arith.constant dense<0.000000e+00> : vector<64x128xf32>
    %6 = tpu.matmul %5, %2, %cst_6 {dimension_numbers = #tpu.dot_dimension_numbers<[1], [0], [0], [1], [0, 0, 1, 1], [], []>} : vector<64x8xf32>, vector<8x128xf32>, vector<64x128xf32> -> vector<64x128xf32>
    %cst_7 = arith.constant 0.000000e+00 : f32
    %7 = vector.broadcast %cst_7 : f32 to vector<64x128xf32>
    %8 = arith.subf %7, %6 : vector<64x128xf32>
    %9 = math.exp %8 : vector<64x128xf32>
    %cst_8 = arith.constant 1.000000e+00 : f32
    %10 = vector.broadcast %cst_8 : f32 to vector<64x128xf32>
    %11 = arith.addf %10, %9 : vector<64x128xf32>
    %cst_9 = arith.constant 1.000000e+00 : f32
    %12 = vector.broadcast %cst_9 : f32 to vector<64x128xf32>
    %13 = arith.divf %12, %11 : vector<64x128xf32>
    %14 = arith.mulf %0, %13 : vector<64x128xf32>
    %c0_10 = arith.constant 0 : index
    %c0_11 = arith.constant 0 : index
    %15 = vector.load %arg4[%c0_10, %c0_11] : memref<64x128xf32, #tpu.memory_space<vmem>>, vector<64x128xf32>
    tpu.vector_store %arg4[%c0_10, %c0_11], %14 {strides = array<i32>} : memref<64x128xf32, #tpu.memory_space<vmem>>, vector<64x128xf32>,
    return
  }
  func.func @transform_0(%arg0: i32) -> (i32, i32) {
    %c0_i32 = arith.constant 0 : i32
    %c0_i32_0 = arith.constant 0 : i32
    return %arg0, %c0_i32 : i32, i32
  }
  func.func @transform_1(%arg0: i32) -> (i32, i32) {
    %c0_i32 = arith.constant 0 : i32
    %c0_i32_0 = arith.constant 0 : i32
    %c0_i32_1 = arith.constant 0 : i32
    return %c0_i32, %c0_i32_0 : i32, i32
  }
  func.func @transform_2(%arg0: i32) -> (i32, i32) {
    %c0_i32 = arith.constant 0 : i32
    %c0_i32_0 = arith.constant 0 : i32
    %c0_i32_1 = arith.constant 0 : i32
    return %c0_i32, %c0_i32_0 : i32, i32
  }
  func.func @transform_3(%arg0: i32) -> (i32, i32) {
    %c0_i32 = arith.constant 0 : i32
    %c0_i32_0 = arith.constant 0 : i32
    return %arg0, %c0_i32 : i32, i32
  }
}

</mosaic_0001>

<bundles_post_ra>
// kernel: tpu_custom_call.1
= control target key start
LH: loop header
LB: loop body
LE: loop exit
PB: predicated region body
PF: predicated region fallthrough
CT: control target
= control target key end

     0   :  { %8 = vsyncpa [#allocation3], 0  ;;  %s1091_s0 = inlined_call_operand.vmem [shape: f32[128,128], index: 0, kind: input, shape index: {}]   ;;  %s1092_s1 = inlined_call_operand.vmem [shape: f32[128,8], index: 1, kind: input, shape index: {}]   ;;  %s1093_s2 = inlined_call_operand.vmem [shape: f32[8,128], index: 2, kind: input, shape index: {}]   ;;  %s1094_s3 = inlined_call_operand.hbm [shape: f32[128,128], index: 3, kind: output, shape index: {}]  }
   0x1   :  { %10 = vsyncpa [#allocation3 + $0x1], 0  ;;  %s884_s12 = smov 0   ;;  %s886_s13 = smov 0  }
   0x2   :  { %s888_s14 = smov 0   ;;  %s890_s15 = smov 0  }
   0x3 LB: > { %s905_s16 = sadd.s32 4294967295, %s859_s15   ;;  %s580_s17 = sadd.s32 4294967294, %s859_s15   ;;  %s859_s15 = sphi %s890_s15, %s1100_s15   ;;  %s855_s14 = sphi %s888_s14, %s1099_s14   ;;  %s851_s13 = sphi %s886_s13, %s1098_s13   ;;  %s847_s12 = sphi %s884_s12, %s1097_s12  }
   0x4   : > { %s909_s18 = sadd.s32 1, %s859_s15   ;;  %s91_s19 = sadd.s32 1, %s855_s14 }
   0x5   : > { %s88_s20 = ssub.s32 %s859_s15, %s909_s18  ;;  %p101_p0 = scmp.ne.s32.totalorder %s855_s14, %s851_s13 }
   0x6   : > { %p89_p1 = scmp.eq.s32.totalorder %s88_s20, 0  ;;  %p102_p2 = scmp.eq.s32.totalorder %s905_s16, 1 }
   0x7   : > { %p107_p3 = scmp.ne.s32.totalorder %s851_s13, %s847_s12  ;;  %p108_p4 = scmp.eq.s32.totalorder %s580_s17, 1 }
   0x8   : > { %s920_s21 = scalar_select %p89_p1, %s855_s14, %s91_s19  }
   0x9   : > { %p922_p5 = por %p102_p2, %p101_p0  ;;  %p926_p6 = por %p108_p4, %p107_p3 }
   0xa   : > { %p583_p7 = scmp.ge.s32.totalorder %s859_s15, 1  ;;  %p141_p8 = scmp.lt.s32.totalorder %s859_s15, 3 }
   0xc   : > { %p142_p9 = pnand %p583_p7, %p141_p8 }
   0xd   : > { %v180_v0 = vld [vmem:[%s1092_s1] sm:$0xff] (!%p142_p9)  ;;  %v181_v1 = vld [vmem:[%s1092_s1 + $0x8] sm:$0xff] (!%p142_p9)  ;;  %v182_v2 = vld [vmem:[%s1092_s1 + $0x10] sm:$0xff] (!%p142_p9)  ;;  %s585_s30 = sshll.u32 (!%p142_p9), %s905_s16, 3  ;;  %vm310_vm0 = vcmask (!%p142_p9), 64512   ;;  %s861_s9 = smov (!%p142_p9), [#allocation2]  }
   0xe   : > { %145 = sbr.rel (%p142_p9) target bundleno = 536 (0x218), region = 32  ;;  %v692_v3 = vpack.c.bf16 (!%p142_p9), %v181_v1, %v180_v0  ;;  %v183_v4 = vld [vmem:[%s1092_s1 + $0x18] sm:$0xff] (!%p142_p9)  ;;  %p166_p10 = scmp.lt.s32.totalorder (!%p142_p9), %s585_s30, 15  ;;  %v184_v6 = vld [vmem:[%s1092_s1 + $0x20] sm:$0xff] (!%p142_p9)  ;;  %v185_v7 = vld [vmem:[%s1092_s1 + $0x28] sm:$0xff] (!%p142_p9) }
   0xf   : > { %v696_v5 = vpack.c.bf16 (!%p142_p9), %v183_v4, %v182_v2  ;;  %v700_v8 = vpack.c.bf16 (!%p142_p9), %v185_v7, %v184_v6  ;;  %v186_v9 = vld [vmem:[%s1092_s1 + $0x30] sm:$0xff] (!%p142_p9)  ;;  %v187_v10 = vld [vmem:[%s1092_s1 + $0x38] sm:$0xff] (!%p142_p9)  ;;  %v188_v13 = vld [vmem:[%s1092_s1 + $0x40] sm:$0xff] (!%p142_p9) }
  0x10   : > { %693 = vmatprep.subr.bf16.mxu0 (!%p142_p9), %v692_v3  ;;  %v704_v12 = vpack.c.bf16 (!%p142_p9), %v187_v10, %v186_v9  ;;  %v189_v14 = vld [vmem:[%s1092_s1 + $0x48] sm:$0xff] (!%p142_p9)  ;;  %v190_v16 = vld [vmem:[%s1092_s1 + $0x50] sm:$0xff] (!%p142_p9)  ;;  %v191_v17 = vld [vmem:[%s1092_s1 + $0x58] sm:$0xff] (!%p142_p9) }
  0x11   : > { %695 = vmatpush3.bf16.msra.mxu0 (!%p142_p9), %v692_v3  ;;  %v708_v15 = vpack.c.bf16 (!%p142_p9), %v189_v14, %v188_v13  ;;  %v712_v18 = vpack.c.bf16 (!%p142_p9), %v191_v17, %v190_v16  ;;  %v192_v19 = vld [vmem:[%s1092_s1 + $0x60] sm:$0xff] (!%p142_p9)  ;;  %v193_v20 = vld [vmem:[%s1092_s1 + $0x68] sm:$0xff] (!%p142_p9)  ;;  %v194_v22 = vld [vmem:[%s1092_s1 + $0x70] sm:$0xff] (!%p142_p9) }
  0x12   : > { %697 = vmatprep.subr.bf16.mxu0 (!%p142_p9), %v696_v5  ;;  %v716_v21 = vpack.c.bf16 (!%p142_p9), %v193_v20, %v192_v19  ;;  %v195_v23 = vld [vmem:[%s1092_s1 + $0x78] sm:$0xff] (!%p142_p9)  ;;  %v196_v32 = vld [vmem:[%s1093_s2] sm:$0xff] (!%p142_p9) }
  0x13   : > { %v720_v24 = vpack.c.bf16 (!%p142_p9), %v195_v23, %v194_v22  ;;  %678 = vmatprep.subr.mxu1 (!%p142_p9), %v196_v32 }
  0x14   : > { %679 = vmatpush3.msra.mxu1 (!%p142_p9), %v196_v32 }
  0x15   : > { %s1102_s30 = smov (!%p166_p10, %s585_s30), 15  ;;  %699 = vmatpush3.bf16.msra.mxu0 %v696_v5 }
  0x16   : > { %s586_s10 = sshll.u32 %s1102_s30, 3  ;;  %701 = vmatprep.subr.bf16.mxu0 %v700_v8  ;;  %s600_s30 = sshll.u32 %s905_s16, 10 }
  0x17   : > { %s960_s26 = scalar_lea.vmem %s1091_s0, %s586_s10  ;;  %s1043_s7 = scalar_lea.hbm %s1094_s3, %s600_s30 }
  0x18   : > { %v963_v11 = vld [vmem:[%s960_s26] sm:$0xff]  ;;  %v991_v25 = vld [vmem:[%s960_s26 + $0x8] sm:$0xff]  ;;  %v994_v26 = vld [vmem:[%s960_s26 + $0x10] sm:$0xff]  ;;  %s801_s10 = sshll.u32 %s861_s9, 4  ;;  %s802_s10 = int_to_ptr.vmem [resolvable:$false] %s801_s10 }
  0x19   : > { %666 = vmatprep.mubr.f32.mxu0 %v963_v11  ;;  %703 = vmatpush3.bf16.msra.mxu0 %v700_v8  ;;  %v999_v27 = vld [vmem:[%s960_s26 + $0x18] sm:$0xff]  ;;  %v1002_v28 = vld [vmem:[%s960_s26 + $0x20] sm:$0xff]  ;;  %v1007_v29 = vld [vmem:[%s960_s26 + $0x28] sm:$0xff]  ;;  %s803_s11 = scalar_lea.vmem %s802_s10, 2048 }
  0x1a   : > { %705 = vmatprep.subr.bf16.mxu0 %v704_v12  ;;  %v1010_v30 = vld [vmem:[%s960_s26 + $0x30] sm:$0xff]  ;;  %v1015_v31 = vld [vmem:[%s960_s26 + $0x38] sm:$0xff]  ;;  %s162_s26 = sand.u32 1, %s851_s13  }
  0x1b   : > { %s584_s28 = sshll.u32 %s162_s26, 6  ;;  %s1050_s16 = scalar_lea.sflag [#allocation3], %s162_s26 }
  0x1c   : > { %s164_s29 = scalar_lea.vmem [#allocation2], %s584_s28 }
  0x1d   : > { %707 = vmatpush3.bf16.msra.mxu0 %v704_v12  ;;  %s518_s4 = sshll.u32 %s164_s29, 4  ;;  %s1045_s4 = int_to_ptr.vmem [resolvable:$true] %s518_s4 }
  0x1e   : > { %709 = vmatprep.subr.bf16.mxu0 %v708_v15  ;;  %s797_s8 = scalar_lea.vmem %s1045_s4, 1024  ;;  %p804_p0 = scmp.lt.s32.totalorder %s1045_s4, %s802_s10 }
  0x1f   : > { %p798_p11 = scmp.ne.s32.totalorder %s1045_s4, %s797_s8  ;;  %p805_p1 = scmp.lt.s32.totalorder %s803_s11, %s797_s8 }
  0x21   : > { %711 = vmatpush3.bf16.msra.mxu0 %v708_v15  ;;  %p799_p12 = pnand %p798_p11, %p922_p5  ;;  %p806_p2 = por %p805_p1, %p804_p0 }
  0x22   : > { %713 = vmatprep.subr.bf16.mxu0 %v712_v18 }
  0x23   : > { %p800_p13 = pneg %p799_p12 }
  0x25   : > { %715 = vmatpush3.bf16.msra.mxu0 %v712_v18  ;;  %p807_p3 = pnand %p806_p2, %p800_p13 }
  0x26   : > { %717 = vmatprep.subr.bf16.mxu0 %v716_v21 }
  0x29   : > { %719 = vmatpush3.bf16.msra.mxu0 %v716_v21 }
  0x2a   : > { %721 = vmatprep.subr.bf16.mxu0 %v720_v24 }
  0x2d   : > { %723 = vmatpush3.bf16.msra.mxu0 %v720_v24 }
  0x30   : > { %667 = vmatmul.mubr.f32.vlgmr.msra.gmra.mrb[0].mxu0 %v991_v25 }
  0x31   : > { %669 = vmatprep.mubr.f32.mxu0 %v994_v26 }
  0x34   : > { %670 = vmatmul.mubr.f32.gmra.mrb[2].mxu0 %v999_v27 }
  0x35   : > { %672 = vmatprep.mubr.f32.mxu0 %v1002_v28 }
  0x38   : > { %673 = vmatmul.mubr.f32.gmra.mrb[4].mxu0 %v1007_v29 }
  0x39   : > { %675 = vmatprep.mubr.f32.mxu0 %v1010_v30 }
  0x3c   : > { %676 = vmatmul.mubr.f32.gmra.mrb[6].mxu0 %v1015_v31 }
 0x103   : > { %v668_v33 = vpop.f32.mrb[0].mxu0 }
 0x104   : > { %v263_v34 = vpop.f32.mrb[1].mxu0  ;;  %v303_v36 = vmax.f32 %v668_v33, 0.0 }
 0x105   : > { %v302_v35 = vmax.f32 %v263_v34, 0.0 }
 0x107   : > { %v671_v37 = vpop.f32.mrb[2].mxu0  ;;  %680 = vmatprep.mubr.msk.f32.mxu1 %vm310_vm0, %v302_v35 }
 0x108   : > { %v273_v38 = vpop.f32.mrb[3].mxu0  ;;  %681 = vmatmul.mubr.msk.f32.vlgmr.msra.gmra.mrb[0].mxu1 %vm310_vm0, %v303_v36  ;;  %v305_v40 = vmax.f32 %v671_v37, 0.0 }
 0x109   : > { %v304_v39 = vmax.f32 %v273_v38, 0.0 }
 0x10b   : > { %v674_v41 = vpop.f32.mrb[4].mxu0  ;;  %683 = vmatprep.mubr.msk.f32.mxu1 %vm310_vm0, %v304_v39 }
 0x10c   : > { %v283_v42 = vpop.f32.mrb[5].mxu0  ;;  %684 = vmatmul.mubr.msk.f32.gmra.mrb[2].mxu1 %vm310_vm0, %v305_v40  ;;  %v307_v44 = vmax.f32 %v674_v41, 0.0 }
 0x10d   : > { %v306_v43 = vmax.f32 %v283_v42, 0.0 }
 0x10f   : > { %v677_v45 = vpop.f32.mrb[6].mxu0  ;;  %686 = vmatprep.mubr.msk.f32.mxu1 %vm310_vm0, %v306_v43 }
 0x110   : > { %v293_v46 = vpop.f32.mrb[7].mxu0  ;;  %687 = vmatmul.mubr.msk.f32.gmra.mrb[4].mxu1 %vm310_vm0, %v307_v44  ;;  %v309_v48 = vmax.f32 %v677_v45, 0.0 }
 0x111   : > { %v308_v47 = vmax.f32 %v293_v46, 0.0 }
 0x113   : > { %689 = vmatprep.mubr.msk.f32.mxu1 %vm310_vm0, %v308_v47 }
 0x114   : > { %690 = vmatmul.mubr.msk.f32.gmra.mrb[6].mxu1 %vm310_vm0, %v309_v48 }
 0x1db   : > { %v682_v49 = vpop.f32.mrb[0].mxu1 }
 0x1dc   : > { %v441_v50 = vsub.f32 0.0, %v682_v49  ;;  %v401_v51 = vpop.f32.mrb[1].mxu1 }
 0x1dd   : > { %v440_v52 = vsub.f32 0.0, %v401_v51 }
 0x1de   : > { %v450_v53 = vmul.f32 1.442695, %v441_v50 }
 0x1df   : > { %v448_v54 = vmul.f32 1.442695, %v440_v52  ;;  %v685_v55 = vpop.f32.mrb[2].mxu1 }
 0x1e0   : > { %765 = vpow2.f32 %v450_v53  ;;  %v443_v56 = vsub.f32 0.0, %v685_v55  ;;  %v411_v57 = vpop.f32.mrb[3].mxu1 }
 0x1e1   : > { %767 = vpow2.f32 %v448_v54  ;;  %v442_v58 = vsub.f32 0.0, %v411_v57 }
 0x1e2   : > { %v454_v59 = vmul.f32 1.442695, %v443_v56 }
 0x1e3   : > { %v452_v60 = vmul.f32 1.442695, %v442_v58  ;;  %v688_v61 = vpop.f32.mrb[4].mxu1 }
 0x1e4   : > { %769 = vpow2.f32 %v454_v59  ;;  %v445_v62 = vsub.f32 0.0, %v688_v61  ;;  %v421_v63 = vpop.f32.mrb[5].mxu1 }
 0x1e5   : > { %771 = vpow2.f32 %v452_v60  ;;  %v444_v0 = vsub.f32 0.0, %v421_v63 }
 0x1e6   : > { %v458_v1 = vmul.f32 1.442695, %v445_v62 }
 0x1e7   : > { %v456_v2 = vmul.f32 1.442695, %v444_v0  ;;  %v691_v3 = vpop.f32.mrb[6].mxu1 }
 0x1e8   : > { %773 = vpow2.f32 %v458_v1  ;;  %v447_v4 = vsub.f32 0.0, %v691_v3  ;;  %v431_v5 = vpop.f32.mrb[7].mxu1 }
 0x1e9   : > { %775 = vpow2.f32 %v456_v2  ;;  %v446_v6 = vsub.f32 0.0, %v431_v5 }
 0x1ea   : > { %v766_v7 = vpop.eup %765  ;;  %v462_v8 = vmul.f32 1.442695, %v447_v4 }
 0x1eb   : > { %v768_v9 = vpop.eup %767  ;;  %v465_v10 = vadd.f32 1.0, %v766_v7  ;;  %v460_v12 = vmul.f32 1.442695, %v446_v6 }
 0x1ec   : > { %v464_v13 = vadd.f32 1.0, %v768_v9  ;;  %777 = vpow2.f32 %v462_v8 }
 0x1ed   : > { %779 = vrcp.f32 %v465_v10 }
 0x1ee   : > { %v770_v14 = vpop.eup %769  ;;  %781 = vrcp.f32 %v464_v13 }
 0x1ef   : > { %v772_v15 = vpop.eup %771  ;;  %v467_v16 = vadd.f32 1.0, %v770_v14  ;;  %783 = vpow2.f32 %v460_v12 }
 0x1f0   : > { %v466_v17 = vadd.f32 1.0, %v772_v15 }
 0x1f1   : > { %785 = vrcp.f32 %v467_v16 }
 0x1f2   : > { %v774_v18 = vpop.eup %773  ;;  %787 = vrcp.f32 %v466_v17 }
 0x1f3   : > { %v776_v19 = vpop.eup %775  ;;  %v469_v20 = vadd.f32 1.0, %v774_v18 }
 0x1f4   : > { %v468_v21 = vadd.f32 1.0, %v776_v19 }
 0x1f5   : > { %789 = vrcp.f32 %v469_v20 }
 0x1f6   : > { %v778_v22 = vpop.eup %777  ;;  %791 = vrcp.f32 %v468_v21 }
 0x1f7   : > { %v780_v23 = vpop.eup %779  ;;  %v471_v24 = vadd.f32 1.0, %v778_v22 }
 0x1f8   : > { %v782_v32 = vpop.eup %781  ;;  %v489_v33 = vmul.f32 %v780_v23, %v991_v25 }
 0x1f9   : > { %v784_v34 = vpop.eup %783  ;;  %v488_v35 = vmul.f32 %v782_v32, %v963_v11  ;;  %793 = vrcp.f32 %v471_v24 }
 0x1fa   : > { %497 = vst [vmem:[%s164_s29 + $0x8] sm:$0xff] %v489_v33  ;;  %v470_v36 = vadd.f32 1.0, %v784_v34 }
 0x1fb   : > { %v786_v37 = vpop.eup %785  ;;  %496 = vst [vmem:[%s164_s29] sm:$0xff] %v488_v35 }
 0x1fc   : > { %v788_v38 = vpop.eup %787  ;;  %v491_v39 = vmul.f32 %v786_v37, %v999_v27  ;;  %795 = vrcp.f32 %v470_v36 }
 0x1fd   : > { %v490_v40 = vmul.f32 %v788_v38, %v994_v26 }
 0x1fe   : > { %499 = vst [vmem:[%s164_s29 + $0x18] sm:$0xff] %v491_v39 }
 0x1ff   : > { %v790_v41 = vpop.eup %789  ;;  %498 = vst [vmem:[%s164_s29 + $0x10] sm:$0xff] %v490_v40 }
 0x200   : > { %v792_v25 = vpop.eup %791  ;;  %v493_v11 = vmul.f32 %v790_v41, %v1007_v29 }
 0x201   : > { %v492_v42 = vmul.f32 %v792_v25, %v1002_v28 }
 0x202   : > { %501 = vst [vmem:[%s164_s29 + $0x28] sm:$0xff] %v493_v11 }
 0x203   : > { %v794_v43 = vpop.eup %793  ;;  %500 = vst [vmem:[%s164_s29 + $0x20] sm:$0xff] %v492_v42 }
 0x204   : > { %v495_v27 = vmul.f32 %v794_v43, %v1015_v31 }
 0x206   : > { %v796_v44 = vpop.eup %795  ;;  %503 = vst [vmem:[%s164_s29 + $0x38] sm:$0xff] %v495_v27 }
 0x207   : > { %v494_v26 = vmul.f32 %v796_v44, %v1010_v30 }
 0x209   : > { %502 = vst [vmem:[%s164_s29 + $0x30] sm:$0xff] %v494_v26 }
 0x20a   : > { %810 = shalt.err (!%p807_p3)
}
 0x20b   : > { %s811_s17 = scalar_lea.hbm %s1043_s7, 1024  ;;  %s815_s24 = scalar_lea.hbm %s1094_s3, 2048 }
 0x20c   : > { %p812_p4 = scmp.ne.s32.totalorder %s1043_s7, %s811_s17  ;;  %p816_p9 = scmp.lt.u32.totalorder %s1043_s7, %s1094_s3 }
 0x20d   : > { %p817_p10 = scmp.lt.u32.totalorder %s815_s24, %s811_s17  ;;  %p819_p12 = scmp.lt.u32.totalorder %s811_s17, %s1043_s7 }
 0x20e   : > { %p813_p7 = pnand %p812_p4, %p922_p5 }
 0x20f   : > { %p818_p11 = por %p817_p10, %p816_p9 }
 0x210   : > { %p814_p8 = pneg %p813_p7 }
 0x211   : > { %p820_p13 = por %p819_p12, %p818_p11 }
 0x213   : > { %p821_p0 = pnand %p820_p13, %p814_p8 }
 0x215   : > { %824 = shalt.err (!%p821_p0)
}
 0x216   : > { %s862_s26 = smov 128   ;;  %s863_s28 = smov 8  }
 0x217   : > { %724 = dma.vmem_to_hbm [thread:$0]  (%p922_p5), %s1045_s4, 1024, %s1043_s7, %s1050_s16, %s862_s26, %s862_s26, %s863_s28  }
 0x218 PF: > { %p730_p1 = scmp.ge.s32.totalorder %s859_s15, 2  ;;  %s533_s29 = sand.u32 1, %s847_s12  }
 0x219   : > { %s534_s30 = scalar_lea.sflag [#allocation3], %s533_s29 }
 0x21a   : > { %p727_p2 = pnand %p730_p1, %p926_p6 }
 0x21c   : > { %842 = dma.done.wait (!%p727_p2), %s534_s30, 1024  }
 0x21d   : > { %844 = vsyncadd (!%p727_p2), %s534_s30, 4294966272  ;;  %p13_p3 = scmp.ge.s32.totalorder %s909_s18, 4   ;;  %s1097_s12 = smov %s851_s13 }
 0x21e   : > { %s1098_s13 = smov %s855_s14  ;;  %s1099_s14 = smov %s920_s21 }
 0x21f   : > { %s1100_s15 = smov %s909_s18  ;;  %15 = sbr.rel (!%p13_p3) target bundleno = 3 (0x3), region = 67 }
 0x226   :  { %539 = vsyncpa [#allocation3], 1 }
 0x227   :  { %541 = vsyncpa [#allocation3 + $0x1], 1 }

</bundles_post_ra>
